<compile_context>
chip_gen: v5e
topology: v5e:2x2
jax: 0.10.0
libtpu: 0.0.40
codegen_flags: <defaults>
</compile_context>

<pallas_src>
import functools

import jax
import jax.numpy as jnp
from jax.experimental import pallas as pl
from jax.experimental.pallas import tpu as pltpu


def _round_up(x, m):
    return ((x + m - 1) // m) * m


def _tpu_generation_info():
    """Best-effort hardware query; conservative (v7x-sized VMEM) fallback."""
    vmem_cap = 64 << 20
    is_v7x = False
    is_v5 = False
    try:
        vmem_cap = int(pltpu.get_tpu_info().vmem_capacity_bytes)
    except Exception:
        pass
    try:
        kind = jax.devices()[0].device_kind.lower()
        is_v5 = "v5" in kind
        is_v7x = "7" in kind
    except Exception:
        pass
    return vmem_cap, is_v7x, is_v5


def _gated_rms_norm_kernel(x_ref, scale_ref, gate_ref, o_ref, *,
                           d, eps, approx_recip, low_precision_gate):
    # ---- Pass 1: per-row sum of squares in f32 (reduction precision). ----
    xf = x_ref[...].astype(jnp.float32)
    ssq = jnp.sum(xf * xf, axis=-1, keepdims=True)        # (tr, 1)
    rms = jnp.sqrt(ssq) * (d ** -0.5)                      # uses the TRUE d, not d_pad
    # Per-row reciprocal on the (tr, 1) column; per-element work becomes one multiply.
    inv = pl.reciprocal(rms + eps, approx=approx_recip)

    # ---- Pass 2: re-read x so no full f32 tile copy must stay live across the
    # reduction (keeps the VMEM tile-size math honest, esp. under v7x's 64 MiB). ----
    x2 = x_ref[...]
    if low_precision_gate:
        # bf16 VALU/EUP path (v6e/v7x): gating + scaling in the input dtype.
        dt = x2.dtype
        g = jax.nn.sigmoid(gate_ref[...].astype(dt) * x2)
        y = (x2 * inv.astype(dt)) * scale_ref[...].astype(dt) * g
        o_ref[...] = y.astype(o_ref.dtype)
    else:
        # Full f32 path (f32 inputs, or v5e which has no bf16 VPU/EUP).
        xf2 = x2.astype(jnp.float32)
        scale = scale_ref[...].astype(jnp.float32)
        gate = gate_ref[...].astype(jnp.float32)
        y = scale * (xf2 * inv) * jax.nn.sigmoid(gate * xf2)
        o_ref[...] = y.astype(o_ref.dtype)


def _choose_tile_rows(rows, d_pad, itemsize, tile_rows, vmem_budget_bytes):
    """Largest sublane-aligned row tile that fits the VMEM budget.

    Footprint model: double-buffered input + output tiles (4 * itemsize per elem)
    plus headroom for one f32 intermediate copy (8 bytes per elem).  No fixed row
    cap: big tiles are what keep this HBM-bound kernel near the roofline."""
    sub = {4: 8, 2: 16, 1: 32}.get(itemsize, 8)
    rows_padded = _round_up(rows, sub)
    per_row_bytes = d_pad * (4 * itemsize + 8)
    budget_rows = max(sub, vmem_budget_bytes // max(per_row_bytes, 1))
    budget_rows_aligned = max(sub, (budget_rows // sub) * sub)
    if tile_rows is None:
        tile_rows = budget_rows_aligned
    tr = _round_up(int(tile_rows), sub)
    tr = min(tr, budget_rows_aligned, rows_padded)   # never exceed the VMEM budget
    return max(sub, tr)


def gated_rms_norm(x, scale, gate, eps: float = 1e-8, tile_rows=None,
                   approx_recip=None, low_precision_gate=None):
    """Matches PyTorch GatedRMSNorm.forward:
       scale * (x / (||x||_2 / sqrt(d) + eps)) * sigmoid(gate * x)."""
    orig_shape = x.shape
    d = orig_shape[-1]
    assert scale.shape == (d,) and gate.shape == (d,)

    itemsize = jnp.dtype(x.dtype).itemsize
    vmem_cap, is_v7x, is_v5 = _tpu_generation_info()

    if approx_recip is None:
        # Approximate EUP reciprocal only for low-precision outputs; exact for f32.
        approx_recip = itemsize < 4
    if low_precision_gate is None:
        # bf16 gating math only where the VPU/EUP support it (v6e/v7x).
        low_precision_gate = (itemsize < 4) and (not is_v5)

    # Lane-dense feature axis: pad d to a multiple of 128 so output stores are
    # unmasked.  Zero-padded lanes contribute 0 to the norm and scale=0 zeroes
    # their outputs, which are sliced away afterwards.
    d_pad = _round_up(max(d, 128), 128)
    x2 = x.reshape(-1, d)
    rows = x2.shape[0]
    scale2 = scale.reshape(1, d)
    gate2 = gate.reshape(1, d)
    if d_pad != d:
        pad = d_pad - d
        x2 = jnp.pad(x2, ((0, 0), (0, pad)))
        scale2 = jnp.pad(scale2, ((0, 0), (0, pad)))
        gate2 = jnp.pad(gate2, ((0, 0), (0, pad)))

    # Generation-aware VMEM budgeting: ~75% of physical VMEM for tiles
    # (~96 MiB on v5e/v6e's 128 MiB, ~48 MiB on v7x's 64 MiB); never request
    # more than ~85% of physical from the compiler.
    vmem_budget = int(vmem_cap * 0.75)
    vmem_limit_cap = max(32 << 20, int(vmem_cap * 0.85))

    tr = _choose_tile_rows(rows, d_pad, itemsize, tile_rows, vmem_budget)
    grid = (pl.cdiv(rows, tr),)   # ragged last block: padded rows compute garbage
                                  # whose stores are dropped; per-row math keeps
                                  # valid rows exact.

    vmem_bytes = (4 * tr * d_pad * itemsize   # double-buffered in + out tiles
                  + 2 * tr * d_pad * 4        # f32 intermediate headroom
                  + 8 * d_pad * 4             # resident scale/gate
                  + (1 << 20))                # slack
    vmem_limit = int(min(max(vmem_bytes, 16 << 20), vmem_limit_cap))

    cost = pl.CostEstimate(
        flops=8 * rows * d_pad,
        transcendentals=2 * rows * d_pad + rows,
        bytes_accessed=2 * rows * d_pad * itemsize + 2 * d_pad * itemsize,
    )

    kernel = functools.partial(
        _gated_rms_norm_kernel, d=d, eps=eps,
        approx_recip=approx_recip, low_precision_gate=low_precision_gate)

    def _call(dim_semantics):
        return pl.pallas_call(
            kernel,
            out_shape=jax.ShapeDtypeStruct((rows, d_pad), x.dtype),
            grid_spec=pltpu.PrefetchScalarGridSpec(
                num_scalar_prefetch=0,
                grid=grid,
                in_specs=[
                    pl.BlockSpec((tr, d_pad), lambda i: (i, 0)),   # x rows
                    pl.BlockSpec((1, d_pad), lambda i: (0, 0)),    # scale (resident)
                    pl.BlockSpec((1, d_pad), lambda i: (0, 0)),    # gate (resident)
                ],
                out_specs=pl.BlockSpec((tr, d_pad), lambda i: (i, 0)),
            ),
            compiler_params=pltpu.CompilerParams(
                dimension_semantics=dim_semantics,
                vmem_limit_bytes=vmem_limit,
            ),
            cost_estimate=cost,
        )(x2, scale2, gate2)

    if is_v7x:
        # v7x: shard the streaming row loop across both TensorCores (a single TC's
        # DMA issue rate cannot sink the full 3.2 TB/s HBM bandwidth).
        try:
            out = _call((pltpu.CORE_PARALLEL,))
        except Exception:
            out = _call(("parallel",))
    else:
        out = _call(("parallel",))

    if d_pad != d:
        out = out[:, :d]
    return out.reshape(orig_shape)


if __name__ == "__main__":
    key = jax.random.PRNGKey(0)
    kx, ks, kg = jax.random.split(key, 3)
    batch, seq, hidden = 2, 8, 32
    x = jax.random.normal(kx, (batch, seq, hidden), dtype=jnp.float32)
    scale = 1.0 + 0.1 * jax.random.normal(ks, (hidden,), dtype=jnp.float32)
    gate = 1.0 + 0.1 * jax.random.normal(kg, (hidden,), dtype=jnp.float32)
    eps = 1e-8

    y = gated_rms_norm(x, scale, gate, eps=eps)
    y = jax.block_until_ready(y)

    # Reference (plain JAX), matching PyTorch GatedRMSNorm.forward exactly.
    norm = jnp.linalg.norm(x, ord=2, axis=-1, keepdims=True)
    rms = norm * (hidden ** -0.5)
    x_normed = x / (rms + eps)
    y_ref = scale * x_normed * jax.nn.sigmoid(gate * x)
    assert jnp.allclose(y, y_ref, atol=1e-5, rtol=1e-5), \
        float(jnp.max(jnp.abs(y - y_ref)))

    print("KERNEL_OK")
</pallas_src>

<mosaic_0001>
module attributes {stable_mosaic.version = 11 : i64} {
  func.func @_gated_rms_norm_kernel(%arg0: i32, %arg1: memref<16x128xf32, #tpu.memory_space<vmem>>, %arg2: memref<1x128xf32, #tpu.memory_space<vmem>>, %arg3: memref<1x128xf32, #tpu.memory_space<vmem>>, %arg4: memref<16x128xf32, #tpu.memory_space<vmem>>) attributes {dimension_semantics = [#tpu.dimension_semantics<parallel>], iteration_bounds = array<i64: 1>, scalar_prefetch = 0 : i64, scratch_operands = 0 : i64, tpu.core_type = #tpu.core_type<tc>, window_params = [{transform_indices = @transform_0, window_bounds = array<i64: 16, 128>}, {pipeline_mode = #tpu.pipeline_mode<synchronous>, transform_indices = @transform_1, window_bounds = array<i64: 1, 128>}, {pipeline_mode = #tpu.pipeline_mode<synchronous>, transform_indices = @transform_2, window_bounds = array<i64: 1, 128>}, {transform_indices = @transform_3, window_bounds = array<i64: 16, 128>}]} {
    %c0 = arith.constant 0 : index
    %c0_0 = arith.constant 0 : index
    %0 = vector.load %arg1[%c0, %c0_0] : memref<16x128xf32, #tpu.memory_space<vmem>>, vector<16x128xf32>
    %1 = arith.mulf %0, %0 : vector<16x128xf32>
    %cst = arith.constant dense<0.000000e+00> : vector<16xf32>
    %2 = vector.multi_reduction <add>, %1, %cst [1] : vector<16x128xf32> to vector<16xf32>
    %3 = vector.shape_cast %2 : vector<16xf32> to vector<16x1xf32>
    %4 = math.sqrt %3 : vector<16x1xf32>
    %cst_1 = arith.constant 0.176776692 : f32
    %5 = vector.broadcast %cst_1 : f32 to vector<16x1xf32>
    %6 = arith.mulf %4, %5 : vector<16x1xf32>
    %cst_2 = arith.constant 9.99999993E-9 : f32
    %7 = vector.broadcast %cst_2 : f32 to vector<16x1xf32>
    %8 = arith.addf %6, %7 : vector<16x1xf32>
    %9 = tpu.reciprocal %8 : vector<16x1xf32> -> vector<16x1xf32>
    %c0_3 = arith.constant 0 : index
    %c0_4 = arith.constant 0 : index
    %10 = vector.load %arg1[%c0_3, %c0_4] : memref<16x128xf32, #tpu.memory_space<vmem>>, vector<16x128xf32>
    %c0_5 = arith.constant 0 : index
    %c0_6 = arith.constant 0 : index
    %11 = vector.load %arg2[%c0_5, %c0_6] : memref<1x128xf32, #tpu.memory_space<vmem>>, vector<1x128xf32>
    %c0_7 = arith.constant 0 : index
    %c0_8 = arith.constant 0 : index
    %12 = vector.load %arg3[%c0_7, %c0_8] : memref<1x128xf32, #tpu.memory_space<vmem>>, vector<1x128xf32>
    %13 = vector.broadcast %9 : vector<16x1xf32> to vector<16x128xf32>
    %14 = arith.mulf %10, %13 : vector<16x128xf32>
    %15 = vector.broadcast %11 : vector<1x128xf32> to vector<16x128xf32>
    %16 = arith.mulf %15, %14 : vector<16x128xf32>
    %17 = vector.broadcast %12 : vector<1x128xf32> to vector<16x128xf32>
    %18 = arith.mulf %17, %10 : vector<16x128xf32>
    %19 = arith.negf %18 : vector<16x128xf32>
    %20 = math.exp %19 : vector<16x128xf32>
    %cst_9 = arith.constant 1.000000e+00 : f32
    %21 = vector.broadcast %cst_9 : f32 to vector<16x128xf32>
    %22 = arith.addf %21, %20 : vector<16x128xf32>
    %23 = arith.divf %21, %22 : vector<16x128xf32>
    %24 = arith.mulf %16, %23 : vector<16x128xf32>
    %c0_10 = arith.constant 0 : index
    %c0_11 = arith.constant 0 : index
    %25 = vector.load %arg4[%c0_10, %c0_11] : memref<16x128xf32, #tpu.memory_space<vmem>>, vector<16x128xf32>
    tpu.vector_store %arg4[%c0_10, %c0_11], %24 {strides = array<i32>} : memref<16x128xf32, #tpu.memory_space<vmem>>, vector<16x128xf32>,
    return
  }
  func.func @transform_0(%arg0: i32) -> (i32, i32) {
    %c0_i32 = arith.constant 0 : i32
    %c0_i32_0 = arith.constant 0 : i32
    return %arg0, %c0_i32 : i32, i32
  }
  func.func @transform_1(%arg0: i32) -> (i32, i32) {
    %c0_i32 = arith.constant 0 : i32
    %c0_i32_0 = arith.constant 0 : i32
    %c0_i32_1 = arith.constant 0 : i32
    return %c0_i32, %c0_i32_0 : i32, i32
  }
  func.func @transform_2(%arg0: i32) -> (i32, i32) {
    %c0_i32 = arith.constant 0 : i32
    %c0_i32_0 = arith.constant 0 : i32
    %c0_i32_1 = arith.constant 0 : i32
    return %c0_i32, %c0_i32_0 : i32, i32
  }
  func.func @transform_3(%arg0: i32) -> (i32, i32) {
    %c0_i32 = arith.constant 0 : i32
    %c0_i32_0 = arith.constant 0 : i32
    return %arg0, %c0_i32 : i32, i32
  }
}

</mosaic_0001>

<bundles_post_ra>
// kernel: tpu_custom_call.1
= control target key start
LH: loop header
LB: loop body
LE: loop exit
PB: predicated region body
PF: predicated region fallthrough
CT: control target
= control target key end

     0   :  { %8 = vsyncpa [#allocation3], 0  ;;  %s363_s0 = inlined_call_operand.hbm [shape: f32[16,128], index: 0, kind: input, shape index: {}]   ;;  %s364_s1 = inlined_call_operand.hbm [shape: f32[1,128], index: 1, kind: input, shape index: {}]   ;;  %s365_s2 = inlined_call_operand.vmem [shape: f32[1,128], index: 2, kind: input, shape index: {}]   ;;  %s366_s3 = inlined_call_operand.hbm [shape: f32[16,128], index: 3, kind: output, shape index: {}]  }
   0x1   :  { %9 = vsyncpa [#allocation6], 0 }
   0x2   :  { %10 = vsyncpa [#allocation4], 0  ;;  %s15_s14 = sshll.u32 %s363_s0, 4  ;;  %s288_s15 = smov [#allocation2]   ;;  %s16_s14 = int_to_ptr.hbm [resolvable:$true] %s15_s14 }
   0x3   :  { %s17_s16 = sshll.u32 %s288_s15, 4  ;;  %s29_s19 = sshll.u32 %s364_s1, 4  ;;  %s18_s16 = int_to_ptr.vmem [resolvable:$true] %s17_s16  ;;  %s30_s19 = int_to_ptr.hbm [resolvable:$true] %s29_s19 }
   0x4   :  { %s289_s20 = smov 128   ;;  %s290_s21 = smov 8  }
   0x5   :  { %23 = dma.hbm_to_vmem [thread:$0]  %s16_s14, 256, %s18_s16, [#allocation3], %s289_s20, %s289_s20, %s290_s21  }
   0x6   :  { %s291_s22 = smov [#allocation5]  }
   0x7   :  { %s31_s23 = sshll.u32 %s291_s22, 4  ;;  %s32_s23 = int_to_ptr.vmem [resolvable:$true] %s31_s23 }
   0x8   :  { %34 = dma.hbm_to_vmem [thread:$0]  %s30_s19, 16, %s32_s23, [#allocation6]  }
   0x9   :  { %282 = dma.done.wait [#allocation3], 256  }
   0xa   :  { %283 = vsyncadd [#allocation3], 4294967040 }
   0xb   :  { %284 = dma.done.wait [#allocation6], 16  }
   0xc   :  { %285 = vsyncadd [#allocation6], 4294967280  ;;  %v322_v0 = vld [vmem:[#allocation2] sm:$0xff]  ;;  %v326_v2 = vld [vmem:[#allocation2 + $0x8] sm:$0xff]  ;;  %s171_s27 = sshll.u32 %s366_s3, 4  ;;  %s172_s27 = int_to_ptr.hbm [resolvable:$true] %s171_s27 }
   0xd   :  { %v47_v1 = vmul.f32 %v322_v0, %v322_v0  ;;  %v48_v3 = vmul.f32 %v326_v2, %v326_v2  ;;  %v192_v4 = vld [vmem:[%s365_s2] ss:$0 sm:$0xff]  ;;  %s292_s2 = smov [#allocation7]  }
   0xe   :  { %v121_v5 = vmul.f32 %v192_v4, %v322_v0  ;;  %v122_v8 = vmul.f32 %v192_v4, %v326_v2  ;;  %s169_s24 = sshll.u32 %s292_s2, 4  ;;  %s170_s24 = int_to_ptr.vmem [resolvable:$true] %s169_s24 }
   0xf   :  { %49 = vadd.xlane.f32.xlu0 %v47_v1  ;;  %v193_v1 = vld [vmem:[#allocation5] ss:$0 sm:$0xff] }
  0x10   :  { %v185_v6 = vmul.f32 -1.442695, %v121_v5  ;;  %v186_v10 = vmul.f32 -1.442695, %v122_v8 }
  0x12   :  { %194 = vpow2.f32 %v185_v6 }
  0x17   :  { %51 = vadd.xlane.f32.xlu0 %v48_v3 }
  0x18   :  { %v195_v9 = vpop.eup %194 }
  0x19   :  { %v129_v14 = vadd.f32 1.0, %v195_v9 }
  0x1b   :  { %vm136_vm4 = vweird.f32 %v129_v14  ;;  %v142_v47 = vand.u32 2147483648, %v129_v14  ;;  %v140_v50 = vand.u32 2147483647, %v129_v14 }
  0x1d   :  { %v143_v56 = vor.u32 1.1754944e-38, %v142_v47  ;;  %vm141_vm9 = vcmp.eq.f32.partialorder %v140_v50, 8.507059e+37 }
  0x82   :  { %v50_v7 = vpop.xlane.xlu0 %49 }
  0x83   :  { %196 = vrsqrt.f32 %v50_v7  ;;  %vm60_vm0 = vcmp.eq.f32.partialorder %v50_v7, inf  ;;  %v63_v25 = vand.u32 2147483648, %v50_v7  ;;  %vm62_vm1 = vcmp.eq.f32.partialorder %v50_v7, 0.0 }
  0x89   :  { %v197_v11 = vpop.eup %196 }
  0x8a   :  { %v54_v12 = vmul.f32 %v197_v11, %v50_v7  ;;  %v52_v13 = vpop.xlane.xlu0 %51 }
  0x8b   :  { %198 = vrsqrt.f32 %v52_v13  ;;  %vm72_vm2 = vcmp.eq.f32.partialorder %v52_v13, inf  ;;  %v75_v36 = vand.u32 2147483648, %v52_v13  ;;  %vm74_vm3 = vcmp.eq.f32.partialorder %v52_v13, 0.0 }
  0x8c   :  { %200 = vpow2.f32 %v186_v10  ;;  %v55_v15 = vmul.f32 %v197_v11, %v54_v12 }
  0x8d   :  { %202 = vrcp.f32 %v129_v14 }
  0x8e   :  { %v56_v16 = vmul.f32 0.5, %v55_v15 }
  0x90   :  { %v57_v17 = vsub.f32 1.5, %v56_v16 }
  0x91   :  { %v199_v18 = vpop.eup %198 }
  0x92   :  { %v201_v19 = vpop.eup %200  ;;  %v58_v20 = vmul.f32 %v197_v11, %v57_v17  ;;  %v66_v21 = vmul.f32 %v199_v18, %v52_v13 }
  0x93   :  { %v335_v24 = vadd.f32 1.0, %v201_v19  ;;  %v203_v26 = vpop.eup %202 }
  0x94   :  { %v59_v22 = vmul.f32 %v58_v20, %v50_v7  ;;  %v67_v23 = vmul.f32 %v199_v18, %v66_v21  ;;  %v132_v32 = vmul.f32 %v203_v26, %v129_v14  ;;  %vm137_vm5 = vweird.f32 %v203_v26 }
  0x95   :  { %204 = vrcp.f32 %v335_v24  ;;  %vm342_vm6 = vmor %vm136_vm4, %vm137_vm5  ;;  %vm151_vm12 = vweird.f32 %v335_v24  ;;  %v155_v9 = vand.u32 2147483647, %v335_v24  ;;  %v157_v10 = vand.u32 2147483648, %v335_v24 }
  0x96   :  { %v61_v27 = vsel %vm60_vm0, %v50_v7, %v59_v22  ;;  %v68_v28 = vmul.f32 0.5, %v67_v23  ;;  %v133_v37 = vsub.f32 1.0, %v132_v32 }
  0x97   :  { %v64_v29 = vsel %vm62_vm1, %v63_v25, %v61_v27  ;;  %v158_v16 = vor.u32 1.1754944e-38, %v157_v10 }
  0x98   :  { %v77_v30 = vmul.f32 0.17677669, %v64_v29  ;;  %v69_v31 = vsub.f32 1.5, %v68_v28  ;;  %v134_v42 = vmul.f32 %v203_v26, %v133_v37 }
  0x9a   :  { %v79_v33 = vadd.f32 1e-08, %v77_v30  ;;  %v70_v34 = vmul.f32 %v199_v18, %v69_v31  ;;  %v135_v49 = vadd.f32 %v203_v26, %v134_v42 }
  0x9b   :  { %v338_v39 = vpop.eup %204 }
  0x9c   :  { %206 = vrcp.f32 %v79_v33  ;;  %v71_v35 = vmul.f32 %v70_v34, %v52_v13  ;;  %v147_v45 = vmul.f32 %v338_v39, %v335_v24  ;;  %v92_v51 = vand.u32 2147483648, %v79_v33 }
  0x9d   :  { %v90_v55 = vand.u32 2147483647, %v79_v33  ;;  %vm86_vm8 = vweird.f32 %v79_v33  ;;  %v139_v58 = vsel %vm342_vm6, %v203_v26, %v135_v49  ;;  %vm152_vm13 = vweird.f32 %v338_v39 }
  0x9e   :  { %v73_v38 = vsel %vm72_vm2, %v52_v13, %v71_v35  ;;  %v148_v53 = vsub.f32 1.0, %v147_v45  ;;  %v93_v60 = vor.u32 1.1754944e-38, %v92_v51  ;;  %v144_v4 = vsel %vm141_vm9, %v143_v56, %v139_v58  ;;  %vm153_vm15 = vmor %vm151_vm12, %vm152_vm13 }
  0x9f   :  { %v76_v40 = vsel %vm74_vm3, %v75_v36, %v73_v38  ;;  %vm91_vm11 = vcmp.eq.f32.partialorder %v90_v55, 8.507059e+37  ;;  %vm156_vm3 = vcmp.eq.f32.partialorder %v155_v9, 8.507059e+37 }
  0xa0   :  { %v78_v41 = vmul.f32 0.17677669, %v76_v40  ;;  %v149_v61 = vmul.f32 %v338_v39, %v148_v53 }
  0xa2   :  { %v207_v43 = vpop.eup %206  ;;  %v80_v44 = vadd.f32 1e-08, %v78_v41  ;;  %v150_v8 = vadd.f32 %v338_v39, %v149_v61 }
  0xa3   :  { %v82_v46 = vmul.f32 %v207_v43, %v79_v33  ;;  %vm87_vm7 = vweird.f32 %v207_v43 }
  0xa4   :  { %208 = vrcp.f32 %v80_v44  ;;  %vm88_vm10 = vmor %vm86_vm8, %vm87_vm7  ;;  %v106_v7 = vand.u32 2147483648, %v80_v44  ;;  %v104_v12 = vand.u32 2147483647, %v80_v44  ;;  %vm100_vm0 = vweird.f32 %v80_v44 }
  0xa5   :  { %v83_v48 = vsub.f32 1.0, %v82_v46  ;;  %v154_v18 = vsel %vm153_vm15, %v338_v39, %v150_v8 }
  0xa6   :  { %vm105_vm2 = vcmp.eq.f32.partialorder %v104_v12, 8.507059e+37  ;;  %v159_v21 = vsel %vm156_vm3, %v158_v16, %v154_v18 }
  0xa7   :  { %v84_v54 = vmul.f32 %v207_v43, %v83_v48 }
  0xa9   :  { %v85_v57 = vadd.f32 %v207_v43, %v84_v54 }
  0xaa   :  { %v209_v59 = vpop.eup %208 }
  0xab   :  { %v89_v62 = vsel %vm88_vm10, %v207_v43, %v85_v57  ;;  %v96_v63 = vmul.f32 %v209_v59, %v80_v44  ;;  %vm101_vm14 = vweird.f32 %v209_v59 }
  0xac   :  { %v94_v3 = vsel %vm91_vm11, %v93_v60, %v89_v62  ;;  %vm102_vm1 = vmor %vm100_vm0, %vm101_vm14 }
  0xad   :  { %v97_v5 = vsub.f32 1.0, %v96_v63  ;;  %v111_v6 = vmul.f32 %v94_v3, %v322_v0  ;;  %v107_v0 = vor.u32 1.1754944e-38, %v106_v7 }
  0xaf   :  { %v98_v11 = vmul.f32 %v209_v59, %v97_v5  ;;  %v116_v13 = vmul.f32 %v193_v1, %v111_v6 }
  0xb1   :  { %v99_v14 = vadd.f32 %v209_v59, %v98_v11  ;;  %v161_v15 = vmul.f32 %v144_v4, %v116_v13 }
  0xb3   :  { %v103_v17 = vsel %vm102_vm1, %v209_v59, %v99_v14  ;;  %163 = vst [vmem:[#allocation7] sm:$0xff] %v161_v15 }
  0xb4   :  { %v108_v19 = vsel %vm105_vm2, %v107_v0, %v103_v17 }
  0xb5   :  { %v112_v20 = vmul.f32 %v108_v19, %v326_v2 }
  0xb7   :  { %v117_v22 = vmul.f32 %v193_v1, %v112_v20 }
  0xb9   :  { %v162_v23 = vmul.f32 %v159_v21, %v117_v22 }
  0xbb   :  { %164 = vst [vmem:[#allocation7 + $0x8] sm:$0xff] %v162_v23 }
  0xbc   :  { %177 = dma.vmem_to_hbm [thread:$0]  %s170_s24, 256, %s172_s27, [#allocation4], %s289_s20, %s289_s20, %s290_s21  }
  0xbd   :  { %286 = dma.done.wait [#allocation4], 256  }
  0xbe   :  { %287 = vsyncadd [#allocation4], 4294967040 }
  0xbf   :  { %182 = vsyncpa [#allocation3], 1 }
  0xc0   :  { %183 = vsyncpa [#allocation6], 1 }
  0xc1   :  { %184 = vsyncpa [#allocation4], 1 }

</bundles_post_ra>
